<compile_context>
chip_gen: v7x
topology: tpu7x:2x2x1
jax: 0.10.0
libtpu: 0.0.40
codegen_flags: <defaults>
</compile_context>

<pallas_src>
import math

import jax
import jax.numpy as jnp
from jax.experimental import pallas as pl
from jax.experimental.pallas import tpu as pltpu

INPUT_SIZE = 5
OUTPUT_SIZE = 1

LANE = 128                  # batch (lane axis) rounding granularity
TB_MAX = 128 * 1024         # max lane-tile: 5 * 131072 * 4 B = 2.5 MiB per block
FASTPATH_MAX_ROWS = 4096    # below this, a fused XLA dot beats kernel launch cost


def _linreg_kernel(x_ref, w_ref, b_ref, o_ref):
    # x_ref: (5, tb) f32 VMEM  -- features on sublanes, batch on lanes
    # w_ref: (5,)    f32 SMEM
    # b_ref: (1,)    f32 SMEM
    # o_ref: (1, tb) f32 VMEM  -- lane-dense output row (unmasked full-width vst)
    acc = x_ref[pl.ds(0, 1), :] * w_ref[0] + b_ref[0]
    for f in range(1, INPUT_SIZE):          # unrolled scalar-broadcast FMAs (VPU)
        acc = acc + x_ref[pl.ds(f, 1), :] * w_ref[f]
    o_ref[...] = acc


def _round_up(x, m):
    return ((x + m - 1) // m) * m


@jax.jit
def linear_regression_forward_fm(x_fm, weight, bias):
    """out = x_fm.T @ weight.T + bias for feature-major x_fm of shape (5, N).

    Equivalent to nn.Linear(5, 1) applied to x_fm.T; returns (N, 1) float32.
    """
    f, n = x_fm.shape
    assert f == INPUT_SIZE and weight.shape == (OUTPUT_SIZE, INPUT_SIZE)

    x_fm = x_fm.astype(jnp.float32)
    w_row = weight[0].astype(jnp.float32)            # (5,)
    b_s = bias.astype(jnp.float32).reshape(1)        # (1,)

    # Small-batch fast path: entirely launch/latency bound -> plain XLA dot.
    if n < FASTPATH_MAX_ROWS:
        return (w_row @ x_fm + b_s[0]).reshape(n, OUTPUT_SIZE)

    # Tile the batch (lane) axis: as few / as large tiles as possible, but at
    # least 2 so the "parallel" axis shards across v7x's two TensorCores.
    n_tiles = max(2, pl.cdiv(n, TB_MAX))
    tb = _round_up(pl.cdiv(_round_up(n, LANE), n_tiles), LANE)
    n_pad = n_tiles * tb          # padding waste bounded by ~2*LANE per tile
    if n_pad != n:
        x_fm = jnp.pad(x_fm, ((0, 0), (0, n_pad - n)))

    out_row = pl.pallas_call(
        _linreg_kernel,
        out_shape=jax.ShapeDtypeStruct((1, n_pad), jnp.float32),
        grid=(n_tiles,),
        in_specs=[
            # (5, tb): first dim equals the full array dim (legal), tb % 128 == 0.
            pl.BlockSpec((INPUT_SIZE, tb), lambda i: (0, i)),
            pl.BlockSpec(memory_space=pltpu.MemorySpace.SMEM),
            pl.BlockSpec(memory_space=pltpu.MemorySpace.SMEM),
        ],
        out_specs=pl.BlockSpec((1, tb), lambda i: (0, i)),
        compiler_params=pltpu.CompilerParams(
            dimension_semantics=("parallel",)),
        cost_estimate=pl.CostEstimate(
            flops=2 * INPUT_SIZE * n_pad,
            transcendentals=0,
            bytes_accessed=(INPUT_SIZE + OUTPUT_SIZE) * 4 * n_pad),
    )(x_fm, w_row, b_s)

    # Padded columns hold only the bias; slice them off. (1, n) row -> (n, 1).
    return out_row[0, :n].reshape(n, OUTPUT_SIZE)


@jax.jit
def linear_regression_forward(x, weight, bias):
    """nn.Linear(5, 1) forward for row-major x of shape (N, 5): x @ W.T + b."""
    n, f = x.shape
    assert f == INPUT_SIZE and weight.shape == (OUTPUT_SIZE, INPUT_SIZE)
    x = x.astype(jnp.float32)
    if n < FASTPATH_MAX_ROWS:
        # Tiny batches: fused XLA dot is cheaper than a custom-call dispatch.
        return x @ weight.astype(jnp.float32).T + bias.astype(jnp.float32)
    # Large row-major batches: one transpose pass to feature-major, then the
    # streaming kernel.  Prefer linear_regression_forward_fm directly when the
    # producer can hand over feature-major data (data_df.values already is, in
    # the original pipeline) to avoid this extra HBM pass.
    return linear_regression_forward_fm(x.T, weight, bias)


def init_linear_params(key, in_features, out_features):
    # Deterministic init mirroring nn.Linear's default: U(-1/sqrt(in), 1/sqrt(in)).
    kw, kb = jax.random.split(key)
    bound = 1.0 / math.sqrt(in_features)
    weight = jax.random.uniform(kw, (out_features, in_features), jnp.float32,
                                minval=-bound, maxval=bound)
    bias = jax.random.uniform(kb, (out_features,), jnp.float32,
                              minval=-bound, maxval=bound)
    return weight, bias


if __name__ == "__main__":
    key = jax.random.PRNGKey(0)
    k_x, k_p = jax.random.split(key)

    weight, bias = init_linear_params(k_p, INPUT_SIZE, OUTPUT_SIZE)

    # Feature-major events, as the upstream producer (data_df.values) yields:
    # 5 feature rows x n_events columns.  8192 events keeps the demo small but
    # large enough to exercise the Pallas path (grid of 2 "parallel" tiles).
    n_events = 8192
    x_fm = jax.random.normal(k_x, (INPUT_SIZE, n_events), jnp.float32)

    out = jax.block_until_ready(linear_regression_forward_fm(x_fm, weight, bias))
    ref = x_fm.T @ weight.T + bias
    assert out.shape == (n_events, OUTPUT_SIZE)
    assert jnp.allclose(out, ref, atol=1e-5, rtol=1e-5)

    # Row-major nn.Linear-style API on a tiny batch (plain-JAX fast path).
    x_small = jax.random.normal(k_x, (8, INPUT_SIZE), jnp.float32)
    out_small = jax.block_until_ready(
        linear_regression_forward(x_small, weight, bias))
    ref_small = x_small @ weight.T + bias
    assert out_small.shape == (8, OUTPUT_SIZE)
    assert jnp.allclose(out_small, ref_small, atol=1e-5, rtol=1e-5)

    # TODO(synk): components_edep/features (uproot+pandas data prep) are host-side
    # preprocessing, not kernel work; only the nn.Linear forward is a Pallas kernel.
    print("KERNEL_OK")
</pallas_src>

<mosaic_0001>
module attributes {stable_mosaic.version = 11 : i64} {
  func.func @_linreg_kernel(%arg0: i32, %arg1: memref<5x4096xf32, #tpu.memory_space<vmem>>, %arg2: memref<5xf32, #tpu.memory_space<smem>>, %arg3: memref<1xf32, #tpu.memory_space<smem>>, %arg4: memref<1x4096xf32, #tpu.memory_space<vmem>>) attributes {dimension_semantics = [#tpu.dimension_semantics<parallel>], iteration_bounds = array<i64: 2>, scalar_prefetch = 0 : i64, scratch_operands = 0 : i64, tpu.core_type = #tpu.core_type<tc>, window_params = [{transform_indices = @transform_0, window_bounds = array<i64: 5, 4096>}, {transform_indices = @transform_1, window_bounds = array<i64: 5>}, {transform_indices = @transform_2, window_bounds = array<i64: 1>}, {transform_indices = @transform_3, window_bounds = array<i64: 1, 4096>}]} {
    %c0 = arith.constant 0 : index
    %c0_0 = arith.constant 0 : index
    %0 = vector.load %arg1[%c0, %c0_0] : memref<5x4096xf32, #tpu.memory_space<vmem>>, vector<1x4096xf32>
    %c0_1 = arith.constant 0 : index
    %1 = memref.load %arg2[%c0_1] : memref<5xf32, #tpu.memory_space<smem>>
    %2 = vector.broadcast %1 : f32 to vector<1x4096xf32>
    %3 = arith.mulf %0, %2 : vector<1x4096xf32>
    %c0_2 = arith.constant 0 : index
    %4 = memref.load %arg3[%c0_2] : memref<1xf32, #tpu.memory_space<smem>>
    %5 = vector.broadcast %4 : f32 to vector<1x4096xf32>
    %6 = arith.addf %3, %5 : vector<1x4096xf32>
    %c1 = arith.constant 1 : index
    %c0_3 = arith.constant 0 : index
    %7 = vector.load %arg1[%c1, %c0_3] : memref<5x4096xf32, #tpu.memory_space<vmem>>, vector<1x4096xf32>
    %c1_4 = arith.constant 1 : index
    %8 = memref.load %arg2[%c1_4] : memref<5xf32, #tpu.memory_space<smem>>
    %9 = vector.broadcast %8 : f32 to vector<1x4096xf32>
    %10 = arith.mulf %7, %9 : vector<1x4096xf32>
    %11 = arith.addf %6, %10 : vector<1x4096xf32>
    %c2 = arith.constant 2 : index
    %c0_5 = arith.constant 0 : index
    %12 = vector.load %arg1[%c2, %c0_5] : memref<5x4096xf32, #tpu.memory_space<vmem>>, vector<1x4096xf32>
    %c2_6 = arith.constant 2 : index
    %13 = memref.load %arg2[%c2_6] : memref<5xf32, #tpu.memory_space<smem>>
    %14 = vector.broadcast %13 : f32 to vector<1x4096xf32>
    %15 = arith.mulf %12, %14 : vector<1x4096xf32>
    %16 = arith.addf %11, %15 : vector<1x4096xf32>
    %c3 = arith.constant 3 : index
    %c0_7 = arith.constant 0 : index
    %17 = vector.load %arg1[%c3, %c0_7] : memref<5x4096xf32, #tpu.memory_space<vmem>>, vector<1x4096xf32>
    %c3_8 = arith.constant 3 : index
    %18 = memref.load %arg2[%c3_8] : memref<5xf32, #tpu.memory_space<smem>>
    %19 = vector.broadcast %18 : f32 to vector<1x4096xf32>
    %20 = arith.mulf %17, %19 : vector<1x4096xf32>
    %21 = arith.addf %16, %20 : vector<1x4096xf32>
    %c4 = arith.constant 4 : index
    %c0_9 = arith.constant 0 : index
    %22 = vector.load %arg1[%c4, %c0_9] : memref<5x4096xf32, #tpu.memory_space<vmem>>, vector<1x4096xf32>
    %c4_10 = arith.constant 4 : index
    %23 = memref.load %arg2[%c4_10] : memref<5xf32, #tpu.memory_space<smem>>
    %24 = vector.broadcast %23 : f32 to vector<1x4096xf32>
    %25 = arith.mulf %22, %24 : vector<1x4096xf32>
    %26 = arith.addf %21, %25 : vector<1x4096xf32>
    %c0_11 = arith.constant 0 : index
    %c0_12 = arith.constant 0 : index
    %27 = vector.load %arg4[%c0_11, %c0_12] : memref<1x4096xf32, #tpu.memory_space<vmem>>, vector<1x4096xf32>
    tpu.vector_store %arg4[%c0_11, %c0_12], %26 {strides = array<i32>} : memref<1x4096xf32, #tpu.memory_space<vmem>>, vector<1x4096xf32>,
    return
  }
  func.func @transform_0(%arg0: i32) -> (i32, i32) {
    %c0_i32 = arith.constant 0 : i32
    %c0_i32_0 = arith.constant 0 : i32
    return %c0_i32, %arg0 : i32, i32
  }
  func.func @transform_1(%arg0: i32) -> i32 {
    %c0_i32 = arith.constant 0 : i32
    %c0_i32_0 = arith.constant 0 : i32
    return %c0_i32 : i32
  }
  func.func @transform_2(%arg0: i32) -> i32 {
    %c0_i32 = arith.constant 0 : i32
    %c0_i32_0 = arith.constant 0 : i32
    return %c0_i32 : i32
  }
  func.func @transform_3(%arg0: i32) -> (i32, i32) {
    %c0_i32 = arith.constant 0 : i32
    %c0_i32_0 = arith.constant 0 : i32
    return %c0_i32, %arg0 : i32, i32
  }
}

</mosaic_0001>

<bundles_post_ra>
// kernel: linear_regression_forward_fm.1
= control target key start
LH: loop header
LB: loop body
LE: loop exit
PB: predicated region body
PF: predicated region fallthrough
CT: control target
= control target key end

     0   :  { %s976_s0 = inlined_call_operand.hbm [shape: f32[5,8192], index: 0, kind: input, shape index: {}]   ;;  %s977_s1 = inlined_call_operand.vmem [shape: f32[5], index: 1, kind: input, shape index: {}]   ;;  %s978_s2 = inlined_call_operand.<no memory space> [shape: f32[1], index: 2, kind: input, shape index: {}]   ;;  %s979_s3 = inlined_call_operand.hbm [shape: f32[1,8192], index: 3, kind: output, shape index: {}]  }
   0x1   :  { %8 = sst [smem:[#allocation2]] %s978_s2 }
   0x2   :  { %9 = vsyncpa [#allocation4], 0 }
   0x3   :  { %11 = vsyncpa [#allocation4 + $0x1], 0 }
   0x4   :  { %12 = vsyncpa [#allocation6], 0 }
   0x5   :  { %13 = vsyncpa [#allocation5], 0 }
   0x6   :  { %15 = vsyncpa [#allocation5 + $0x1], 0  ;;  %s696_s14 = smov 0   ;;  %s698_s15 = smov 0  }
   0x7   :  { %s700_s16 = smov 0   ;;  %s702_s17 = smov 0  }
   0x8 LB: > { %s717_s2 = sadd.s32 4294967295, %s668_s17   ;;  %s436_s18 = sadd.s32 4294967294, %s668_s17   ;;  %s668_s17 = sphi %s702_s17, %s1000_s17   ;;  %s664_s16 = sphi %s700_s16, %s999_s16   ;;  %s660_s15 = sphi %s698_s15, %s998_s15   ;;  %s656_s14 = sphi %s696_s14, %s997_s14  }
   0x9   : > { %p41_p0 = scmp.ne.s32.totalorder %s660_s15, %s656_s14  ;;  %p980_p1 = scmp.eq.s32.totalorder %s717_s2, 0 }
   0xa   : > { %p113_p3 = scmp.eq.s32.totalorder %s436_s18, 1  ;;  %p437_p5 = scmp.ge.s32.totalorder %s668_s17, 1 }
   0xb   : > { %p726_p4 = por %p980_p1, %p41_p0  ;;  %p120_p7 = scmp.lt.s32.totalorder %s668_s17, 3 }
   0xc   : > { %p731_p6 = por %p113_p3, %p41_p0  ;;  %s133_s23 = sshll.u32 %s977_s1, 4  ;;  %s134_s23 = int_to_ptr.vmem [resolvable:$true] %s133_s23 }
   0xd   : > { %s983_s19 = scalar_select %p726_p4, 1, 0 }
   0xe   : > { %s984_s20 = scalar_select %p731_p6, 1, 0 }
   0xf   : > { %p739_p8 = pnand %p437_p5, %p120_p7  ;;  %s747_s25 = sadd.s32 1, %s668_s17  }
  0x10   : > { %s25_s27 = ssub.s32 %s668_s17, %s747_s25  ;;  %s28_s29 = sadd.s32 1, %s664_s16 }
  0x11   : > { %p504_p10 = pneg %p739_p8  ;;  %p757_p12 = scmp.eq.s32.totalorder %s25_s27, 0 }
  0x12   : > { %p35_p13 = scmp.ne.s32.totalorder %s664_s16, %s660_s15  ;;  %s553_s30 = scalar_lea.vmem %s134_s23, 16 }
  0x13   : > { %p751_p11 = pnand %p504_p10, %p980_p1  ;;  %p554_p0 = scmp.ne.s32.totalorder %s134_s23, %s553_s30 }
  0x14   : > { %p561_p9 = scmp.lt.s32.totalorder %s134_s23, %s134_s23  ;;  %p562_p2 = scmp.lt.s32.totalorder %s553_s30, %s553_s30 }
  0x15   : > { %p555_p3 = pneg %p751_p11 }
  0x16   : > { %p563_p10 = por %p562_p2, %p561_p9 }
  0x17   : > { %p556_p5 = pnand %p555_p3, %p554_p0 }
  0x19   : > { %p557_p7 = pneg %p556_p5 }
  0x1b   : > { %p564_p1 = pnand %p563_p10, %p557_p7 }
  0x1d   : > { %567 = shalt.err (!%p564_p1)
}
  0x1e   : > { %s670_s4 = smov [#allocation7]   ;;  %p36_p2 = scmp.eq.s32.totalorder %s668_s17, 0 }
  0x1f   : > { %507 = dma.vmem_to_smem (!%p751_p11), %s134_s23, 16, %s670_s4, [#allocation6]  }
  0x20   : > { %s771_s5 = scalar_select %p757_p12, %s664_s16, %s28_s29  }
  0x21   : > { %p988_p1 = scmp.eq.s32.totalorder %s717_s2, 1  ;;  %p517_p0 = scmp.lt.s32.totalorder %s668_s17, 2 }
  0x22   : > { %s147_s7 = sand.u32 1, %s664_s16   ;;  %p37_p3 = por %p36_p2, %p35_p13 }
  0x23   : > { %p779_p9 = por %p988_p1, %p35_p13  ;;  %s440_s8 = sshll.u32 %s147_s7, 8 }
  0x24   : > { %s494_s9 = sshll.u32 %s668_s17, 12  ;;  %s151_s13 = scalar_lea.vmem [#allocation3], %s440_s8 }
  0x25   : > { %s989_s6 = scalar_select %p779_p9, 1, 0 }
  0x26   : > { %s792_s12 = scalar_lea.hbm %s976_s0, %s494_s9  ;;  %s159_s18 = sshll.u32 %s151_s13, 4  ;;  %s798_s18 = int_to_ptr.vmem [resolvable:$true] %s159_s18 }
  0x27   : > { %p794_p11 = pnand %p517_p0, %p37_p3  ;;  %s148_s22 = scalar_lea.sflag [#allocation4], %s147_s7 }
  0x28   : > { %s568_s23 = scalar_lea.hbm %s792_s12, 4096  ;;  %s573_s28 = scalar_lea.hbm %s976_s0, 8192 }
  0x29   : > { %p569_p12 = scmp.ne.s32.totalorder %s792_s12, %s568_s23  ;;  %p570_p13 = pneg %p794_p11 }
  0x2a   : > { %p574_p10 = scmp.lt.u32.totalorder %s792_s12, %s976_s0  ;;  %p575_p2 = scmp.lt.u32.totalorder %s573_s28, %s568_s23 }
  0x2b   : > { %p571_p5 = pnand %p570_p13, %p569_p12  ;;  %p577_p0 = scmp.lt.u32.totalorder %s568_s23, %s792_s12 }
  0x2c   : > { %p576_p1 = por %p575_p2, %p574_p10 }
  0x2d   : > { %p572_p7 = pneg %p571_p5 }
  0x2e   : > { %p578_p3 = por %p577_p0, %p576_p1 }
  0x30   : > { %p579_p6 = pnand %p578_p3, %p572_p7 }
  0x32   : > { %582 = shalt.err (!%p579_p6)
}
  0x33   : > { %s583_s4 = scalar_lea.vmem %s798_s18, 4096  ;;  %s671_s7 = smov [#allocation3]  }
  0x34   : > { %p584_p12 = scmp.ne.s32.totalorder %s798_s18, %s583_s4  ;;  %s588_s8 = sshll.u32 %s671_s7, 4  ;;  %s589_s8 = int_to_ptr.vmem [resolvable:$false] %s588_s8 }
  0x35   : > { %s590_s9 = scalar_lea.vmem %s589_s8, 8192  ;;  %p591_p4 = scmp.lt.s32.totalorder %s798_s18, %s589_s8 }
  0x36   : > { %p586_p5 = pnand %p584_p12, %p570_p13  ;;  %p592_p10 = scmp.lt.s32.totalorder %s590_s9, %s583_s4 }
  0x38   : > { %p587_p9 = pneg %p586_p5  ;;  %p593_p2 = por %p592_p10, %p591_p4 }
  0x3a   : > { %p594_p1 = pnand %p593_p2, %p587_p9 }
  0x3c   : > { %597 = shalt.err (!%p594_p1)
}
  0x3d   : > { %511 = dma.hbm_to_vmem [thread:$0]  (!%p794_p11), %s792_s12, 4096, %s798_s18, %s148_s22  }
  0x3e   : > { %168 = sbr.rel (%p739_p8) target bundleno = 123 (0x7b), region = 32  ;;  %s828_s10 = sand.u32 (!%p739_p8), 1, %s660_s15  }
  0x3f   : > { %s444_s11 = sshll.u32 (!%p739_p8), %s828_s10, 8  ;;  %s171_s13 = scalar_lea.sflag (!%p739_p8), [#allocation4], %s828_s10 }
  0x40   : > { %s832_s23 = scalar_lea.vmem (!%p739_p8), [#allocation3], %s444_s11  ;;  %p991_p4 = scmp.ne.s32.totalorder (!%p739_p8), %s983_s19, 0 }
  0x45   : > { %643 = dma.done.wait (%p991_p4), %s171_s13, 4096  }
  0x46   : > { %645 = vsyncadd (%p991_p4), %s171_s13, 4294963200  ;;  %p992_p6 = scmp.eq.s32.totalorder %s717_s2, 0 }
  0x48   : > { %647 = dma.done.wait (%p992_p6), [#allocation6], 16   ;;  %p993_p8 = pmov %p992_p6 }
  0x4a   : > { %649 = vsyncadd (%p993_p8), [#allocation6], 4294967280 }
  0x4b   : > { %183 = sfence }
  0x4c   : > { %v204_v0 = vld [vmem:[%s832_s23] ss:$8 sm:$0xf]  ;;  %s219_s24 = sld [smem:[#allocation7]]  ;;  %s461_s12 = sld [smem:[#allocation7 + $0x1]] }
  0x4d   : > { %v205_v1 = vld [vmem:[%s832_s23] ss:$8 sm:$0xf0]  ;;  %s225_s19 = sld [smem:[#allocation2]]  ;;  %s446_s18 = sshll.u32 %s828_s10, 5 }
  0x4e   : > { %v453_v2 = vld [vmem:[%s832_s23 + $0x1] ss:$8 sm:$0xf]  ;;  %v206_v4 = vor.u32 %v205_v1, %v204_v0  ;;  %v462_v5 = vld [vmem:[%s832_s23 + $0x2] ss:$8 sm:$0xf] }
  0x4f   : > { %v454_v3 = vld [vmem:[%s832_s23 + $0x1] ss:$8 sm:$0xf0]  ;;  %v463_v6 = vld [vmem:[%s832_s23 + $0x2] ss:$8 sm:$0xf0] }
  0x50   : > { %s470_s21 = sld [smem:[#allocation7 + $0x2]]  ;;  %v471_v7 = vld [vmem:[%s832_s23 + $0x3] ss:$8 sm:$0xf]  ;;  %v234_v10 = vor.u32 %v454_v3, %v453_v2  ;;  %s479_s22 = sld [smem:[#allocation7 + $0x3]]  ;;  %v260_v14 = vor.u32 %v463_v6, %v462_v5 }
  0x51   : > { %v472_v8 = vld [vmem:[%s832_s23 + $0x3] ss:$8 sm:$0xf0]  ;;  %v480_v11 = vld [vmem:[%s832_s23 + $0x4] ss:$8 sm:$0xf] }
  0x52   : > { %v851_v9 = vstv %s219_s24  ;;  %v481_v15 = vld [vmem:[%s832_s23 + $0x4] ss:$8 sm:$0xf0]  ;;  %s488_s26 = sld [smem:[#allocation7 + $0x4]]  ;;  %v861_v19 = vstv %s461_s12  ;;  %v286_v20 = vor.u32 %v472_v8, %v471_v7  ;;  %s907_s27 = scalar_lea.vmem [#allocation8], %s446_s18 }
  0x53   : > { %v221_v12 = vmul.f32 %v851_v9, %v206_v4  ;;  %v855_v13 = vstv %s225_s19  ;;  %v447_v16 = vld [vmem:[%s832_s23 + $0x40] ss:$8 sm:$0xf]  ;;  %v455_v22 = vld [vmem:[%s832_s23 + $0x41] ss:$8 sm:$0xf]  ;;  %v249_v24 = vmul.f32 %v861_v19, %v234_v10  ;;  %v312_v26 = vor.u32 %v481_v15, %v480_v11 }
  0x54   : > { %v448_v17 = vld [vmem:[%s832_s23 + $0x40] ss:$8 sm:$0xf0]  ;;  %v456_v23 = vld [vmem:[%s832_s23 + $0x41] ss:$8 sm:$0xf0] }
  0x55   : > { %v227_v18 = vadd.f32 %v855_v13, %v221_v12  ;;  %v210_v21 = vor.u32 %v448_v17, %v447_v16  ;;  %v238_v27 = vor.u32 %v456_v23, %v455_v22  ;;  %v464_v28 = vld [vmem:[%s832_s23 + $0x42] ss:$8 sm:$0xf]  ;;  %v473_v33 = vld [vmem:[%s832_s23 + $0x43] ss:$8 sm:$0xf] }
  0x56   : > { %v866_v25 = vstv %s470_s21  ;;  %v465_v29 = vld [vmem:[%s832_s23 + $0x42] ss:$8 sm:$0xf0]  ;;  %v474_v34 = vld [vmem:[%s832_s23 + $0x43] ss:$8 sm:$0xf0]  ;;  %v874_v36 = vstv %s479_s22 }
  0x57   : > { %v275_v30 = vmul.f32 %v866_v25, %v260_v14  ;;  %v222_v31 = vmul.f32 %v851_v9, %v210_v21  ;;  %v264_v32 = vor.u32 %v465_v29, %v464_v28  ;;  %v253_v35 = vadd.f32 %v249_v24, %v227_v18  ;;  %v482_v39 = vld [vmem:[%s832_s23 + $0x44] ss:$8 sm:$0xf]  ;;  %v449_v45 = vld [vmem:[%s832_s23 + $0x80] ss:$8 sm:$0xf] }
  0x58   : > { %v250_v37 = vmul.f32 %v861_v19, %v238_v27  ;;  %v290_v38 = vor.u32 %v474_v34, %v473_v33  ;;  %v483_v40 = vld [vmem:[%s832_s23 + $0x44] ss:$8 sm:$0xf0]  ;;  %v301_v41 = vmul.f32 %v874_v36, %v286_v20  ;;  %v880_v42 = vstv %s488_s26  ;;  %v450_v46 = vld [vmem:[%s832_s23 + $0x80] ss:$8 sm:$0xf0] }
  0x59   : > { %v228_v43 = vadd.f32 %v855_v13, %v222_v31  ;;  %v276_v44 = vmul.f32 %v866_v25, %v264_v32  ;;  %v279_v47 = vadd.f32 %v275_v30, %v253_v35  ;;  %v327_v48 = vmul.f32 %v880_v42, %v312_v26  ;;  %v457_v50 = vld [vmem:[%s832_s23 + $0x81] ss:$8 sm:$0xf]  ;;  %v466_v56 = vld [vmem:[%s832_s23 + $0x82] ss:$8 sm:$0xf] }
  0x5a   : > { %v316_v49 = vor.u32 %v483_v40, %v482_v39  ;;  %v458_v51 = vld [vmem:[%s832_s23 + $0x81] ss:$8 sm:$0xf0]  ;;  %v302_v53 = vmul.f32 %v874_v36, %v290_v38  ;;  %v214_v54 = vor.u32 %v450_v46, %v449_v45  ;;  %v467_v57 = vld [vmem:[%s832_s23 + $0x82] ss:$8 sm:$0xf0] }
  0x5b   : > { %v254_v52 = vadd.f32 %v250_v37, %v228_v43  ;;  %v242_v55 = vor.u32 %v458_v51, %v457_v50  ;;  %v305_v58 = vadd.f32 %v301_v41, %v279_v47  ;;  %v268_v60 = vor.u32 %v467_v57, %v466_v56  ;;  %v475_v61 = vld [vmem:[%s832_s23 + $0x83] ss:$8 sm:$0xf]  ;;  %v484_v3 = vld [vmem:[%s832_s23 + $0x84] ss:$8 sm:$0xf] }
  0x5c   : > { %v328_v59 = vmul.f32 %v880_v42, %v316_v49  ;;  %v476_v62 = vld [vmem:[%s832_s23 + $0x83] ss:$8 sm:$0xf0]  ;;  %v223_v0 = vmul.f32 %v851_v9, %v214_v54  ;;  %v485_v4 = vld [vmem:[%s832_s23 + $0x84] ss:$8 sm:$0xf0] }
  0x5d   : > { %v280_v63 = vadd.f32 %v276_v44, %v254_v52  ;;  %v251_v1 = vmul.f32 %v861_v19, %v242_v55  ;;  %v294_v2 = vor.u32 %v476_v62, %v475_v61  ;;  %v331_v5 = vadd.f32 %v327_v48, %v305_v58  ;;  %v451_v7 = vld [vmem:[%s832_s23 + $0xc0] ss:$8 sm:$0xf]  ;;  %v459_v15 = vld [vmem:[%s832_s23 + $0xc1] ss:$8 sm:$0xf] }
  0x5e   : > { %v320_v6 = vor.u32 %v485_v4, %v484_v3  ;;  %v452_v8 = vld [vmem:[%s832_s23 + $0xc0] ss:$8 sm:$0xf0]  ;;  %v229_v11 = vadd.f32 %v855_v13, %v223_v0  ;;  %v277_v12 = vmul.f32 %v866_v25, %v268_v60  ;;  %v460_v16 = vld [vmem:[%s832_s23 + $0xc1] ss:$8 sm:$0xf0] }
  0x5f   : > { %v306_v10 = vadd.f32 %v302_v53, %v280_v63  ;;  %v218_v14 = vor.u32 %v452_v8, %v451_v7  ;;  %335 = vst [vmem:[%s907_s27] sm:$0xff] %v331_v5  ;;  %v303_v17 = vmul.f32 %v874_v36, %v294_v2  ;;  %v246_v18 = vor.u32 %v460_v16, %v459_v15  ;;  %v468_v20 = vld [vmem:[%s832_s23 + $0xc2] ss:$8 sm:$0xf]  ;;  %v477_v27 = vld [vmem:[%s832_s23 + $0xc3] ss:$8 sm:$0xf] }
  0x60   : > { %v469_v21 = vld [vmem:[%s832_s23 + $0xc2] ss:$8 sm:$0xf0]  ;;  %v255_v23 = vadd.f32 %v251_v1, %v229_v11  ;;  %v478_v28 = vld [vmem:[%s832_s23 + $0xc3] ss:$8 sm:$0xf0]  ;;  %v329_v29 = vmul.f32 %v880_v42, %v320_v6 }
  0x61   : > { %v332_v22 = vadd.f32 %v328_v59, %v306_v10  ;;  %v224_v24 = vmul.f32 %v851_v9, %v218_v14  ;;  %v272_v26 = vor.u32 %v469_v21, %v468_v20  ;;  %v252_v30 = vmul.f32 %v861_v19, %v246_v18  ;;  %v486_v32 = vld [vmem:[%s832_s23 + $0xc4] ss:$8 sm:$0xf]  ;;  %s495_s28 = sshll.u32 %s717_s2, 9  ;;  %s354_s29 = sshll.u32 %s907_s27, 4  ;;  %s933_s29 = int_to_ptr.vmem [resolvable:$true] %s354_s29 }
  0x62   : > { %v298_v31 = vor.u32 %v478_v28, %v477_v27  ;;  %v487_v33 = vld [vmem:[%s832_s23 + $0xc4] ss:$8 sm:$0xf0]  ;;  %v281_v34 = vadd.f32 %v277_v12, %v255_v23  ;;  %s931_s7 = scalar_lea.hbm %s979_s3, %s495_s28  ;;  %s340_s8 = scalar_lea.sflag [#allocation5], %s828_s10 }
  0x63   : > { %336 = vst [vmem:[%s907_s27 + $0x8] sm:$0xff] %v332_v22  ;;  %v230_v35 = vadd.f32 %v855_v13, %v224_v24  ;;  %v278_v9 = vmul.f32 %v866_v25, %v272_v26  ;;  %v324_v37 = vor.u32 %v487_v33, %v486_v32  ;;  %s598_s9 = scalar_lea.vmem %s933_s29, 512  ;;  %p994_p11 = scmp.ne.s32.totalorder %s989_s6, 0 }
  0x64   : > { %v307_v38 = vadd.f32 %v303_v17, %v281_v34  ;;  %v304_v40 = vmul.f32 %v874_v36, %v298_v31  ;;  %p599_p9 = scmp.ne.s32.totalorder %s933_s29, %s598_s9  ;;  %s672_s2 = smov [#allocation8]  }
  0x65   : > { %v256_v39 = vadd.f32 %v252_v30, %v230_v35  ;;  %v330_v43 = vmul.f32 %v880_v42, %v324_v37  ;;  %s602_s11 = sshll.u32 %s672_s2, 4  ;;  %s603_s11 = int_to_ptr.vmem [resolvable:$false] %s602_s11 }
  0x66   : > { %v333_v19 = vadd.f32 %v329_v29, %v307_v38  ;;  %p600_p13 = pnand %p599_p9, %p994_p11  ;;  %s604_s13 = scalar_lea.vmem %s603_s11, 1024 }
  0x67   : > { %v282_v41 = vadd.f32 %v278_v9, %v256_v39  ;;  %p605_p0 = scmp.lt.s32.totalorder %s933_s29, %s603_s11  ;;  %p606_p3 = scmp.lt.s32.totalorder %s604_s13, %s598_s9 }
  0x68   : > { %337 = vst [vmem:[%s907_s27 + $0x10] sm:$0xff] %v333_v19  ;;  %p601_p7 = pneg %p600_p13 }
  0x69   : > { %v308_v44 = vadd.f32 %v304_v40, %v282_v41  ;;  %p607_p12 = por %p606_p3, %p605_p0 }
  0x6b   : > { %v334_v45 = vadd.f32 %v330_v43, %v308_v44  ;;  %p608_p5 = pnand %p607_p12, %p601_p7 }
  0x6d   : > { %338 = vst [vmem:[%s907_s27 + $0x18] sm:$0xff] %v334_v45 }
  0x6e   : > { %611 = shalt.err (!%p608_p5)
}
  0x6f   : > { %s612_s10 = scalar_lea.hbm %s931_s7, 512  ;;  %s616_s19 = scalar_lea.hbm %s979_s3, 1024 }
  0x70   : > { %p613_p10 = scmp.ne.s32.totalorder %s931_s7, %s612_s10  ;;  %p617_p4 = scmp.lt.u32.totalorder %s931_s7, %s979_s3 }
  0x71   : > { %p618_p6 = scmp.lt.u32.totalorder %s616_s19, %s612_s10  ;;  %p620_p9 = scmp.lt.u32.totalorder %s612_s10, %s931_s7 }
  0x72   : > { %p614_p2 = pnand %p613_p10, %p994_p11 }
  0x73   : > { %p619_p8 = por %p618_p6, %p617_p4 }
  0x74   : > { %p615_p1 = pneg %p614_p2 }
  0x75   : > { %p621_p13 = por %p620_p9, %p619_p8 }
  0x77   : > { %p622_p7 = pnand %p621_p13, %p615_p1 }
  0x79   : > { %625 = shalt.err (!%p622_p7)
}
  0x7a   : > { %502 = dma.vmem_to_hbm [thread:$0]  (%p994_p11), %s933_s29, 512, %s931_s7, %s340_s8  }
  0x7b PF: > { %s366_s21 = sand.u32 1, %s656_s14   ;;  %p995_p0 = scmp.ne.s32.totalorder %s984_s20, 0 }
  0x7c   : > { %p996_p3 = scmp.ge.s32.totalorder %s668_s17, 2  ;;  %s367_s22 = scalar_lea.sflag [#allocation5], %s366_s21 }
  0x7e   : > { %p513_p12 = pnand %p996_p3, %p995_p0 }
  0x80   : > { %651 = dma.done.wait (!%p513_p12), %s367_s22, 512  }
  0x81   : > { %653 = vsyncadd (!%p513_p12), %s367_s22, 4294966784  ;;  %p18_p5 = scmp.ge.s32.totalorder %s747_s25, 4   ;;  %s997_s14 = smov %s660_s15 }
  0x82   : > { %s998_s15 = smov %s664_s16  ;;  %s999_s16 = smov %s771_s5 }
  0x83   : > { %s1000_s17 = smov %s747_s25  ;;  %20 = sbr.rel (!%p18_p5) target bundleno = 8 (0x8), region = 101 }
  0x8a   :  { %372 = vsyncpa [#allocation4], 1 }
  0x8b   :  { %374 = vsyncpa [#allocation4 + $0x1], 1 }
  0x8c   :  { %375 = vsyncpa [#allocation5], 1 }
  0x8d   :  { %377 = vsyncpa [#allocation5 + $0x1], 1 }
  0x8e   :  { %378 = vsyncpa [#allocation6], 1 }
  0x8f   :  { %380 = vsyncpa [#allocation6 + $0x1], 1 }

</bundles_post_ra>
